<compile_context>
chip_gen: v7x
topology: tpu7x:2x2x1
jax: 0.10.0
libtpu: 0.0.40
codegen_flags: <defaults>
</compile_context>

<pallas_src>
import jax
import jax.numpy as jnp
from jax.experimental import pallas as pl
from jax.experimental.pallas import tpu as pltpu

_LN_EPS = 1e-6
_INV_SQRT2 = 0.7071067811865476


def _gelu_exact(v):
    # Exact-erf GELU (matches torch.nn.GELU default).
    return 0.5 * v * (1.0 + jax.lax.erf(v * jnp.float32(_INV_SQRT2)))


# ---------------------------------------------------------------------------
# Fused kernel: per-half LayerNorm + 2 folded ResidualNets + softmax.
# Operates on one (tile_m, 34) row slab; weights are VMEM-resident.
# ---------------------------------------------------------------------------
def _fused_kernel(x_ref, wc0_ref, bc0_ref, wc1_ref, bc1_ref, o_ref):
    x = x_ref[...].astype(jnp.float32)                      # (tm, 34)

    # --- LayerNorm(17, eps=1e-6) over cols [0:17) and [17:34) independently.
    #     Masked reductions avoid any lane-slice / concat relayouts.
    col = jax.lax.broadcasted_iota(jnp.int32, (1, 34), 1)
    in_a = col < 17                                         # (1, 34) bool
    inv17 = jnp.float32(1.0 / 17.0)
    xa = jnp.where(in_a, x, 0.0)
    xb = x - xa
    mean_a = jnp.sum(xa, axis=-1, keepdims=True) * inv17    # (tm, 1)
    mean_b = jnp.sum(xb, axis=-1, keepdims=True) * inv17
    mean = jnp.where(in_a, mean_a, mean_b)                  # (tm, 34)
    d = x - mean
    da = jnp.where(in_a, d, 0.0)
    db = d - da
    var_a = jnp.sum(da * da, axis=-1, keepdims=True) * inv17
    var_b = jnp.sum(db * db, axis=-1, keepdims=True) * inv17
    var = jnp.where(in_a, var_a, var_b)
    xn = d * jax.lax.rsqrt(var + jnp.float32(_LN_EPS))      # LN affine folded into wc0/bc0

    # --- ResidualNet0 (34 -> 32), linears + LN affine pre-folded into wc0/bc0.
    h = _gelu_exact(
        jnp.dot(xn, wc0_ref[...], preferred_element_type=jnp.float32) + bc0_ref[...])
    # --- ResidualNet1 (32 -> 8), linears pre-folded into wc1/bc1.
    z = _gelu_exact(
        jnp.dot(h, wc1_ref[...], preferred_element_type=jnp.float32) + bc1_ref[...])

    # --- softmax over the 8 classes (numerically stable; reciprocal on the EUP slot).
    m = jnp.max(z, axis=-1, keepdims=True)
    e = jnp.exp(z - m)
    o_ref[...] = e * pl.reciprocal(jnp.sum(e, axis=-1, keepdims=True), approx=True)


# ---------------------------------------------------------------------------
# Parameter folding (exact up to float reassociation):
#   ResidualNet:  gelu((x @ W2 + b2 + x) @ W1 + b1) = gelu(x @ ((W2+I)@W1) + (b2@W1 + b1))
#   LN affine:    (xn*g + beta) @ Wc + bc           = xn @ (g[:,None]*Wc) + (beta@Wc + bc)
# Weights stored as (in, out); biases as (1, out).
# ---------------------------------------------------------------------------
def fold_params(params):
    g34 = jnp.concatenate([params["ln_gamma"], params["ln_gamma"]]).astype(jnp.float32)
    b34 = jnp.concatenate([params["ln_beta"], params["ln_beta"]]).astype(jnp.float32)

    wc0 = (params["w2a"] + jnp.eye(34, dtype=jnp.float32)) @ params["w1a"]   # (34, 32)
    bc0 = params["b2a"] @ params["w1a"] + params["b1a"]                      # (1, 32)
    bc0 = b34[None, :] @ wc0 + bc0        # fold LN beta (before gamma scaling of wc0)
    wc0 = g34[:, None] * wc0              # fold LN gamma

    wc1 = (params["w2b"] + jnp.eye(32, dtype=jnp.float32)) @ params["w1b"]   # (32, 8)
    bc1 = params["b2b"] @ params["w1b"] + params["b1b"]                      # (1, 8)
    return wc0, bc0, wc1, bc1


# ---------------------------------------------------------------------------
# Wrapper: one fused, row-tiled pallas_call.
# ---------------------------------------------------------------------------
def classification_forward(x, params, *, max_tile_m=2048):
    # Keypoint (y, x) slice + view: equivalent to x[..., :2].reshape(-1, 2, 17)
    # followed by .reshape(-1, 34) (same row-major flattening).
    # TODO(synk): the score-channel drop stays in the XLA wrapper; an in-kernel
    # strided lane gather over the packed (..., 17, 3) minor dims does not lower
    # cleanly on TPU.
    x2d = x[..., :2].reshape(-1, 34).astype(jnp.float32)
    n = x2d.shape[0]

    wc0, bc0, wc1, bc1 = fold_params(params)
    n_classes = wc1.shape[1]

    # Row tiling: a single block when everything fits, else 2048-row tiles
    # (multiple of 8 sublanes). ~4 MiB VMEM footprint at tile_m=2048 -> fits all
    # of v5e/v6e/v7x with the default scoped VMEM limit.
    if n <= max_tile_m:
        tile_m, grid = n, (1,)
    else:
        tile_m, grid = max_tile_m, (pl.cdiv(n, max_tile_m),)

    return pl.pallas_call(
        _fused_kernel,
        out_shape=jax.ShapeDtypeStruct((n, n_classes), jnp.float32),
        grid=grid,
        in_specs=[
            pl.BlockSpec((tile_m, 34), lambda i: (i, 0)),   # activations: tiled rows
            pl.BlockSpec((34, 32), lambda i: (0, 0)),        # folded weights: resident
            pl.BlockSpec((1, 32), lambda i: (0, 0)),
            pl.BlockSpec((32, 8), lambda i: (0, 0)),
            pl.BlockSpec((1, 8), lambda i: (0, 0)),
        ],
        out_specs=pl.BlockSpec((tile_m, n_classes), lambda i: (i, 0)),
        compiler_params=pltpu.CompilerParams(
            dimension_semantics=("parallel",),   # shard row tiles across v7x's 2 TCs
        ),
    )(x2d, wc0, bc0, wc1, bc1)


# ---------------------------------------------------------------------------
# Pure-JAX reference (mirrors the PyTorch module exactly) for verification.
# ---------------------------------------------------------------------------
def reference_forward(x, params):
    xs = x[..., :2].reshape(-1, 2, 17).astype(jnp.float32)
    mean = xs.mean(-1, keepdims=True)
    var = ((xs - mean) ** 2).mean(-1, keepdims=True)       # biased var (PyTorch LN)
    xn = (xs - mean) / jnp.sqrt(var + _LN_EPS)
    y = xn * params["ln_gamma"] + params["ln_beta"]
    y = y.reshape(-1, 34)

    def res_block(v, w2, b2, w1, b1):
        return _gelu_exact((v @ w2 + b2 + v) @ w1 + b1)

    y = res_block(y, params["w2a"], params["b2a"], params["w1a"], params["b1a"])
    y = res_block(y, params["w2b"], params["b2b"], params["w1b"], params["b1b"])
    return jax.nn.softmax(y, axis=-1)


def init_params(key):
    # layer_input = [34, 32], layer_output = [32, 8]
    ks = jax.random.split(key, 6)

    def lin(k, d_in, d_out, scale=0.1):
        kw, kb = jax.random.split(k)
        w = scale * jax.random.normal(kw, (d_in, d_out), jnp.float32)  # (in, out)
        b = scale * jax.random.normal(kb, (1, d_out), jnp.float32)
        return w, b

    w2a, b2a = lin(ks[0], 34, 34)   # ResidualNet0.linear2
    w1a, b1a = lin(ks[1], 34, 32)   # ResidualNet0.linear1
    w2b, b2b = lin(ks[2], 32, 32)   # ResidualNet1.linear2
    w1b, b1b = lin(ks[3], 32, 8)    # ResidualNet1.linear1

    ln_gamma = 1.0 + 0.1 * jax.random.normal(ks[4], (17,), jnp.float32)
    ln_beta = 0.1 * jax.random.normal(ks[5], (17,), jnp.float32)

    return {
        "ln_gamma": ln_gamma, "ln_beta": ln_beta,
        "w2a": w2a, "b2a": b2a, "w1a": w1a, "b1a": b1a,
        "w2b": w2b, "b2b": b2b, "w1b": w1b, "b1b": b1b,
    }


if __name__ == "__main__":
    key = jax.random.PRNGKey(0)
    k_x, k_p = jax.random.split(key)

    # (batch=2, 1, 17 keypoints, 3 channels [y, x, score])
    x = jax.random.normal(k_x, (2, 1, 17, 3), jnp.float32)
    params = init_params(k_p)

    probs = jax.jit(classification_forward)(x, params)
    probs = jax.block_until_ready(probs)

    assert probs.shape == (2, 8), probs.shape
    ref = reference_forward(x, params)
    # tolerance absorbs the approx EUP reciprocal and the float reassociation of the folds
    assert bool(jnp.allclose(probs, ref, atol=2e-3, rtol=2e-3)), (probs, ref)
    row_sums = jnp.sum(probs, axis=-1)
    assert bool(jnp.all(jnp.abs(row_sums - 1.0) < 2e-3)), row_sums

    print("KERNEL_OK")
</pallas_src>

<mosaic_0001>
module attributes {stable_mosaic.version = 11 : i64} {
  func.func @_fused_kernel(%arg0: i32, %arg1: memref<2x34xf32, #tpu.memory_space<vmem>>, %arg2: memref<34x32xf32, #tpu.memory_space<vmem>>, %arg3: memref<1x32xf32, #tpu.memory_space<vmem>>, %arg4: memref<32x8xf32, #tpu.memory_space<vmem>>, %arg5: memref<1x8xf32, #tpu.memory_space<vmem>>, %arg6: memref<2x8xf32, #tpu.memory_space<vmem>>) attributes {dimension_semantics = [#tpu.dimension_semantics<parallel>], iteration_bounds = array<i64: 1>, scalar_prefetch = 0 : i64, scratch_operands = 0 : i64, tpu.core_type = #tpu.core_type<tc>, window_params = [{transform_indices = @transform_0, window_bounds = array<i64: 2, 34>}, {pipeline_mode = #tpu.pipeline_mode<synchronous>, transform_indices = @transform_1, window_bounds = array<i64: 34, 32>}, {pipeline_mode = #tpu.pipeline_mode<synchronous>, transform_indices = @transform_2, window_bounds = array<i64: 1, 32>}, {pipeline_mode = #tpu.pipeline_mode<synchronous>, transform_indices = @transform_3, window_bounds = array<i64: 32, 8>}, {pipeline_mode = #tpu.pipeline_mode<synchronous>, transform_indices = @transform_4, window_bounds = array<i64: 1, 8>}, {transform_indices = @transform_5, window_bounds = array<i64: 2, 8>}]} {
    %c0 = arith.constant 0 : index
    %c0_0 = arith.constant 0 : index
    %0 = vector.load %arg1[%c0, %c0_0] : memref<2x34xf32, #tpu.memory_space<vmem>>, vector<2x34xf32>
    %1 = tpu.iota {dimensions = array<i32: 1>} : vector<1x34xi32>
    %c17_i32 = arith.constant 17 : i32
    %2 = vector.broadcast %c17_i32 : i32 to vector<1x34xi32>
    %3 = arith.cmpi slt, %1, %2 : vector<1x34xi32>
    %cst = arith.constant 0.000000e+00 : f32
    %4 = vector.shape_cast %3 : vector<1x34xi1> to vector<1x34xi1>
    %5 = vector.broadcast %4 : vector<1x34xi1> to vector<2x34xi1>
    %6 = vector.broadcast %cst : f32 to vector<2x34xf32>
    %7 = arith.select %5, %0, %6 : vector<2x34xi1>, vector<2x34xf32>
    %8 = arith.subf %0, %7 : vector<2x34xf32>
    %cst_1 = arith.constant dense<0.000000e+00> : vector<2xf32>
    %9 = vector.multi_reduction <add>, %7, %cst_1 [1] : vector<2x34xf32> to vector<2xf32>
    %10 = vector.shape_cast %9 : vector<2xf32> to vector<2x1xf32>
    %cst_2 = arith.constant 0.0588235296 : f32
    %11 = vector.broadcast %cst_2 : f32 to vector<2x1xf32>
    %12 = arith.mulf %10, %11 : vector<2x1xf32>
    %cst_3 = arith.constant dense<0.000000e+00> : vector<2xf32>
    %13 = vector.multi_reduction <add>, %8, %cst_3 [1] : vector<2x34xf32> to vector<2xf32>
    %14 = vector.shape_cast %13 : vector<2xf32> to vector<2x1xf32>
    %cst_4 = arith.constant 0.0588235296 : f32
    %15 = vector.broadcast %cst_4 : f32 to vector<2x1xf32>
    %16 = arith.mulf %14, %15 : vector<2x1xf32>
    %17 = vector.shape_cast %3 : vector<1x34xi1> to vector<1x34xi1>
    %18 = vector.broadcast %17 : vector<1x34xi1> to vector<2x34xi1>
    %19 = vector.shape_cast %12 : vector<2x1xf32> to vector<2x1xf32>
    %20 = vector.broadcast %19 : vector<2x1xf32> to vector<2x34xf32>
    %21 = vector.shape_cast %16 : vector<2x1xf32> to vector<2x1xf32>
    %22 = vector.broadcast %21 : vector<2x1xf32> to vector<2x34xf32>
    %23 = arith.select %18, %20, %22 : vector<2x34xi1>, vector<2x34xf32>
    %24 = arith.subf %0, %23 : vector<2x34xf32>
    %cst_5 = arith.constant 0.000000e+00 : f32
    %25 = vector.shape_cast %3 : vector<1x34xi1> to vector<1x34xi1>
    %26 = vector.broadcast %25 : vector<1x34xi1> to vector<2x34xi1>
    %27 = vector.broadcast %cst_5 : f32 to vector<2x34xf32>
    %28 = arith.select %26, %24, %27 : vector<2x34xi1>, vector<2x34xf32>
    %29 = arith.subf %24, %28 : vector<2x34xf32>
    %30 = arith.mulf %28, %28 : vector<2x34xf32>
    %cst_6 = arith.constant dense<0.000000e+00> : vector<2xf32>
    %31 = vector.multi_reduction <add>, %30, %cst_6 [1] : vector<2x34xf32> to vector<2xf32>
    %32 = vector.shape_cast %31 : vector<2xf32> to vector<2x1xf32>
    %cst_7 = arith.constant 0.0588235296 : f32
    %33 = vector.broadcast %cst_7 : f32 to vector<2x1xf32>
    %34 = arith.mulf %32, %33 : vector<2x1xf32>
    %35 = arith.mulf %29, %29 : vector<2x34xf32>
    %cst_8 = arith.constant dense<0.000000e+00> : vector<2xf32>
    %36 = vector.multi_reduction <add>, %35, %cst_8 [1] : vector<2x34xf32> to vector<2xf32>
    %37 = vector.shape_cast %36 : vector<2xf32> to vector<2x1xf32>
    %cst_9 = arith.constant 0.0588235296 : f32
    %38 = vector.broadcast %cst_9 : f32 to vector<2x1xf32>
    %39 = arith.mulf %37, %38 : vector<2x1xf32>
    %40 = vector.shape_cast %3 : vector<1x34xi1> to vector<1x34xi1>
    %41 = vector.broadcast %40 : vector<1x34xi1> to vector<2x34xi1>
    %42 = vector.shape_cast %34 : vector<2x1xf32> to vector<2x1xf32>
    %43 = vector.broadcast %42 : vector<2x1xf32> to vector<2x34xf32>
    %44 = vector.shape_cast %39 : vector<2x1xf32> to vector<2x1xf32>
    %45 = vector.broadcast %44 : vector<2x1xf32> to vector<2x34xf32>
    %46 = arith.select %41, %43, %45 : vector<2x34xi1>, vector<2x34xf32>
    %cst_10 = arith.constant 9.99999997E-7 : f32
    %47 = vector.broadcast %cst_10 : f32 to vector<2x34xf32>
    %48 = arith.addf %46, %47 : vector<2x34xf32>
    %49 = math.rsqrt %48 : vector<2x34xf32>
    %50 = arith.mulf %24, %49 : vector<2x34xf32>
    %c0_11 = arith.constant 0 : index
    %c0_12 = arith.constant 0 : index
    %51 = vector.load %arg2[%c0_11, %c0_12] : memref<34x32xf32, #tpu.memory_space<vmem>>, vector<34x32xf32>
    %cst_13 = arith.constant dense<0.000000e+00> : vector<2x32xf32>
    %52 = tpu.matmul %50, %51, %cst_13 {dimension_numbers = #tpu.dot_dimension_numbers<[1], [0], [0], [1], [0, 0, 1, 1], [], []>} : vector<2x34xf32>, vector<34x32xf32>, vector<2x32xf32> -> vector<2x32xf32>
    %c0_14 = arith.constant 0 : index
    %c0_15 = arith.constant 0 : index
    %53 = vector.load %arg3[%c0_14, %c0_15] : memref<1x32xf32, #tpu.memory_space<vmem>>, vector<1x32xf32>
    %54 = vector.broadcast %53 : vector<1x32xf32> to vector<2x32xf32>
    %55 = arith.addf %52, %54 : vector<2x32xf32>
    %cst_16 = arith.constant 5.000000e-01 : f32
    %56 = vector.broadcast %cst_16 : f32 to vector<2x32xf32>
    %57 = arith.mulf %56, %55 : vector<2x32xf32>
    %cst_17 = arith.constant 0.707106769 : f32
    %58 = vector.broadcast %cst_17 : f32 to vector<2x32xf32>
    %59 = arith.mulf %55, %58 : vector<2x32xf32>
    %60 = math.erf %59 : vector<2x32xf32>
    %cst_18 = arith.constant 1.000000e+00 : f32
    %61 = vector.broadcast %cst_18 : f32 to vector<2x32xf32>
    %62 = arith.addf %61, %60 : vector<2x32xf32>
    %63 = arith.mulf %57, %62 : vector<2x32xf32>
    %c0_19 = arith.constant 0 : index
    %c0_20 = arith.constant 0 : index
    %64 = vector.load %arg4[%c0_19, %c0_20] : memref<32x8xf32, #tpu.memory_space<vmem>>, vector<32x8xf32>
    %cst_21 = arith.constant dense<0.000000e+00> : vector<2x8xf32>
    %65 = tpu.matmul %63, %64, %cst_21 {dimension_numbers = #tpu.dot_dimension_numbers<[1], [0], [0], [1], [0, 0, 1, 1], [], []>} : vector<2x32xf32>, vector<32x8xf32>, vector<2x8xf32> -> vector<2x8xf32>
    %c0_22 = arith.constant 0 : index
    %c0_23 = arith.constant 0 : index
    %66 = vector.load %arg5[%c0_22, %c0_23] : memref<1x8xf32, #tpu.memory_space<vmem>>, vector<1x8xf32>
    %67 = vector.broadcast %66 : vector<1x8xf32> to vector<2x8xf32>
    %68 = arith.addf %65, %67 : vector<2x8xf32>
    %cst_24 = arith.constant 5.000000e-01 : f32
    %69 = vector.broadcast %cst_24 : f32 to vector<2x8xf32>
    %70 = arith.mulf %69, %68 : vector<2x8xf32>
    %cst_25 = arith.constant 0.707106769 : f32
    %71 = vector.broadcast %cst_25 : f32 to vector<2x8xf32>
    %72 = arith.mulf %68, %71 : vector<2x8xf32>
    %73 = math.erf %72 : vector<2x8xf32>
    %cst_26 = arith.constant 1.000000e+00 : f32
    %74 = vector.broadcast %cst_26 : f32 to vector<2x8xf32>
    %75 = arith.addf %74, %73 : vector<2x8xf32>
    %76 = arith.mulf %70, %75 : vector<2x8xf32>
    %cst_27 = arith.constant dense<0xFF800000> : vector<2xf32>
    %77 = vector.multi_reduction <maximumf>, %76, %cst_27 [1] : vector<2x8xf32> to vector<2xf32>
    %78 = vector.shape_cast %77 : vector<2xf32> to vector<2x1xf32>
    %79 = vector.broadcast %78 : vector<2x1xf32> to vector<2x8xf32>
    %80 = arith.subf %76, %79 : vector<2x8xf32>
    %81 = math.exp %80 : vector<2x8xf32>
    %cst_28 = arith.constant dense<0.000000e+00> : vector<2xf32>
    %82 = vector.multi_reduction <add>, %81, %cst_28 [1] : vector<2x8xf32> to vector<2xf32>
    %83 = vector.shape_cast %82 : vector<2xf32> to vector<2x1xf32>
    %84 = tpu.reciprocal %83 {approx = true} : vector<2x1xf32> -> vector<2x1xf32>
    %85 = vector.broadcast %84 : vector<2x1xf32> to vector<2x8xf32>
    %86 = arith.mulf %81, %85 : vector<2x8xf32>
    %c0_29 = arith.constant 0 : index
    %c0_30 = arith.constant 0 : index
    %87 = vector.load %arg6[%c0_29, %c0_30] : memref<2x8xf32, #tpu.memory_space<vmem>>, vector<2x8xf32>
    tpu.vector_store %arg6[%c0_29, %c0_30], %86 {strides = array<i32>} : memref<2x8xf32, #tpu.memory_space<vmem>>, vector<2x8xf32>,
    return
  }
  func.func @transform_0(%arg0: i32) -> (i32, i32) {
    %c0_i32 = arith.constant 0 : i32
    %c0_i32_0 = arith.constant 0 : i32
    return %arg0, %c0_i32 : i32, i32
  }
  func.func @transform_1(%arg0: i32) -> (i32, i32) {
    %c0_i32 = arith.constant 0 : i32
    %c0_i32_0 = arith.constant 0 : i32
    %c0_i32_1 = arith.constant 0 : i32
    return %c0_i32, %c0_i32_0 : i32, i32
  }
  func.func @transform_2(%arg0: i32) -> (i32, i32) {
    %c0_i32 = arith.constant 0 : i32
    %c0_i32_0 = arith.constant 0 : i32
    %c0_i32_1 = arith.constant 0 : i32
    return %c0_i32, %c0_i32_0 : i32, i32
  }
  func.func @transform_3(%arg0: i32) -> (i32, i32) {
    %c0_i32 = arith.constant 0 : i32
    %c0_i32_0 = arith.constant 0 : i32
    %c0_i32_1 = arith.constant 0 : i32
    return %c0_i32, %c0_i32_0 : i32, i32
  }
  func.func @transform_4(%arg0: i32) -> (i32, i32) {
    %c0_i32 = arith.constant 0 : i32
    %c0_i32_0 = arith.constant 0 : i32
    %c0_i32_1 = arith.constant 0 : i32
    return %c0_i32, %c0_i32_0 : i32, i32
  }
  func.func @transform_5(%arg0: i32) -> (i32, i32) {
    %c0_i32 = arith.constant 0 : i32
    %c0_i32_0 = arith.constant 0 : i32
    return %arg0, %c0_i32 : i32, i32
  }
}

</mosaic_0001>

<bundles_post_ra>
// kernel: classification_forward.1
= control target key start
LH: loop header
LB: loop body
LE: loop exit
PB: predicated region body
PF: predicated region fallthrough
CT: control target
= control target key end

     0   :  { %v22_v0 = vlaneseq  ;;  %s451_s0 = inlined_call_operand.vmem [shape: f32[2,34], index: 0, kind: input, shape index: {}]   ;;  %s452_s1 = inlined_call_operand.vmem [shape: f32[34,32], index: 1, kind: input, shape index: {}]   ;;  %s453_s2 = inlined_call_operand.vmem [shape: f32[1,32], index: 2, kind: input, shape index: {}]   ;;  %s454_s3 = inlined_call_operand.vmem [shape: f32[32,8], index: 3, kind: input, shape index: {}]   ;;  %s455_s4 = inlined_call_operand.vmem [shape: f32[1,8], index: 4, kind: input, shape index: {}]   ;;  %s456_s5 = inlined_call_operand.hbm [shape: f32[2,8], index: 5, kind: output, shape index: {}]  }
   0x1   :  { %10 = vsyncpa [#allocation3], 0  ;;  %v21_v1 = vld [vmem:[%s451_s0] sm:$0x3]  ;;  %vm29_vm0 = vcmask 271360   ;;  %v57_v20 = vld [vmem:[%s452_s1 + $0x8] sm:$0xff] }
   0x2   :  { %v23_v2 = vand.u32 127, %v22_v0  ;;  %v56_v19 = vld [vmem:[%s452_s1] sm:$0xff]  ;;  %v58_v21 = vld [vmem:[%s452_s1 + $0x10] sm:$0xff]  ;;  %v358_v22 = vmov 0.0|0.0   ;;  %v59_v24 = vld [vmem:[%s452_s1 + $0x18] sm:$0xff]  ;;  %vm359_vm2 = vmmov 0  }
   0x3   :  { %308 = vmatprep.subr.bf16.mxu0 %v358_v22  ;;  %v309_v23 = vpack.c.bf16 %v57_v20, %v56_v19  ;;  %314 = vmatprep.subr.bf16.mxu1 %v358_v22  ;;  %v360_v25 = vmov 0.0   ;;  %v312_v26 = vpack.c.bf16 %v59_v24, %v58_v21  ;;  %v60_v27 = vld [vmem:[%s452_s1 + $0x20] sm:$0x3]  ;;  %vm72_vm3 = vcmask 1041408   ;;  %v152_v37 = vld [vmem:[%s454_s3 + $0x8] sm:$0xff]  ;;  %v153_v39 = vld [vmem:[%s454_s3 + $0x10] sm:$0xff] }
   0x4   :  { %vm24_vm1 = vcmp.lt.s32.totalorder %v23_v2, 17  ;;  %294 = vmatprep.mubr.msk.f32.mxu0 %vm359_vm2, %v360_v25  ;;  %305 = vmatprep.mubr.msk.f32.mxu1 %vm359_vm2, %v360_v25  ;;  %vm68_vm4 = vcmask 277504   ;;  %v151_v36 = vld [vmem:[%s454_s3] sm:$0xff]  ;;  %v154_v40 = vld [vmem:[%s454_s3 + $0x18] sm:$0xff]  ;;  %vm162_vm5 = vcmask 261120   ;;  %vm241_vm6 = vcmask 58368  }
   0x5   :  { %v27_v3 = vsel %vm24_vm1, %v21_v1, 0.0  ;;  %310 = vmatpush3.bf16.msra.mxu0 %v309_v23  ;;  %v315_v38 = vpack.c.bf16 %v152_v37, %v151_v36  ;;  %v318_v41 = vpack.c.bf16 %v154_v40, %v153_v39  ;;  %v268_v42 = vld [vmem:[%s453_s2] ss:$0 sm:$0xff]  ;;  %s361_s2 = smov [#allocation2]  }
   0x6   :  { %v30_v4 = vsel %vm29_vm0, %v27_v3, 0.0  ;;  %v28_v5 = vsub.f32 %v21_v1, %v27_v3  ;;  %311 = vmatprep.subr.bf16.mxu0 %v358_v22  ;;  %v271_v51 = vld [vmem:[%s455_s4] ss:$0 sm:$0xff]  ;;  %s260_s3 = sshll.u32 %s361_s2, 4  ;;  %s261_s3 = int_to_ptr.vmem [resolvable:$true] %s260_s3 }
   0x7   :  { %31 = vadd.xlane.f32.xlu0 %v30_v4  ;;  %316 = vmatpush3.bf16.msra.mxu1 %v315_v38  ;;  %s334_s4 = scalar_lea.vmem %s261_s3, 32  ;;  %p339_p1 = scmp.lt.s32.totalorder %s261_s3, %s261_s3 }
   0x8   :  { %v34_v6 = vsel %vm29_vm0, %v28_v5, 0.0  ;;  %317 = vmatprep.subr.bf16.mxu1 %v358_v22  ;;  %p335_p0 = scmp.ne.s32.totalorder %s261_s3, %s334_s4  ;;  %p340_p2 = scmp.lt.s32.totalorder %s334_s4, %s334_s4 }
   0x9   :  { %313 = vmatpush3.bf16.msra.mxu0 %v312_v26 }
   0xa   :  { %292 = vmatprep.subr.mxu0 %v360_v25  ;;  %p341_p3 = por %p340_p2, %p339_p1 }
   0xb   :  { %35 = vadd.xlane.f32.xlu0 %v34_v6  ;;  %319 = vmatpush3.bf16.msra.mxu1 %v318_v41 }
   0xc   :  { %p342_p4 = pnand %p341_p3, %p335_p0 }
   0xd   :  { %293 = vmatpush3.msk.msra.mxu0 %vm72_vm3, %v60_v27 }
  0x94   :  { %v32_v7 = vpop.xlane.xlu0 %31 }
  0x95   :  { %v33_v9 = vmul.f32 0.05882353, %v32_v7 }
  0x98   :  { %v36_v8 = vpop.xlane.xlu0 %35 }
  0x99   :  { %v37_v10 = vmul.f32 0.05882353, %v36_v8 }
  0x9b   :  { %v38_v11 = vsel %vm24_vm1, %v33_v9, %v37_v10 }
  0x9c   :  { %v39_v12 = vsub.f32 %v21_v1, %v38_v11 }
  0x9e   :  { %v40_v13 = vsel %vm24_vm1, %v39_v12, 0.0 }
  0x9f   :  { %v42_v14 = vmul.f32 %v40_v13, %v40_v13  ;;  %v41_v15 = vsub.f32 %v39_v12, %v40_v13 }
  0xa1   :  { %v43_v16 = vsel %vm29_vm0, %v42_v14, 0.0  ;;  %v47_v17 = vmul.f32 %v41_v15, %v41_v15 }
  0xa2   :  { %44 = vadd.xlane.f32.xlu1 %v43_v16 }
  0xa3   :  { %v48_v18 = vsel %vm29_vm0, %v47_v17, 0.0 }
  0xa6   :  { %49 = vadd.xlane.f32.xlu1 %v48_v18 }
 0x12f   :  { %v45_v28 = vpop.xlane.xlu1 %44 }
 0x130   :  { %v46_v30 = vmul.f32 0.05882353, %v45_v28 }
 0x133   :  { %v50_v29 = vpop.xlane.xlu1 %49 }
 0x134   :  { %v51_v31 = vmul.f32 0.05882353, %v50_v29 }
 0x136   :  { %v52_v32 = vsel %vm24_vm1, %v46_v30, %v51_v31 }
 0x137   :  { %v53_v33 = vadd.f32 1e-06, %v52_v32 }
 0x139   :  { %324 = vrsqrt.f32 %v53_v33 }
 0x143   :  { %v325_v34 = vpop.eup %324 }
 0x144   :  { %v55_v35 = vmul.f32 %v325_v34, %v39_v12 }
 0x146   :  { %295 = vmatmul.mubr.msk.f32.vlgmr.msra.gmra.mrb[0].mxu0 %vm68_vm4, %v55_v35 }
 0x219   :  { %v142_v43 = vpop.f32.mrb[0].mxu0 }
 0x21a   :  { %v143_v44 = vadd.f32 %v268_v42, %v142_v43  ;;  %v296_v45 = vpop.f32.mrb[1].mxu0 }
 0x21c   :  { %v147_v46 = vmul.f32 0.70710677, %v143_v44  ;;  %v146_v48 = vmul.f32 0.5, %v143_v44 }
 0x21e   :  { %326 = verf.f32 %v147_v46 }
 0x228   :  { %v327_v47 = vpop.eup %326 }
 0x229   :  { %v149_v49 = vadd.f32 1.0, %v327_v47 }
 0x22b   :  { %v150_v50 = vmul.f32 %v149_v49, %v146_v48 }
 0x22d   :  { %306 = vmatmul.mubr.msk.f32.vlgmr.msra.gmra.mrb[0].mxu1 %vm162_vm5, %v150_v50 }
 0x300   :  { %v232_v52 = vpop.f32.mrb[0].mxu1 }
 0x301   :  { %v233_v53 = vadd.f32 %v271_v51, %v232_v52  ;;  %v307_v54 = vpop.f32.mrb[1].mxu1 }
 0x303   :  { %v237_v55 = vmul.f32 0.70710677, %v233_v53  ;;  %v236_v57 = vmul.f32 0.5, %v233_v53 }
 0x305   :  { %328 = verf.f32 %v237_v55 }
 0x30f   :  { %v329_v56 = vpop.eup %328 }
 0x310   :  { %v239_v58 = vadd.f32 1.0, %v329_v56 }
 0x312   :  { %v240_v59 = vmul.f32 %v239_v58, %v236_v57 }
 0x314   :  { %v242_v60 = vsel %vm241_vm6, %v240_v59, -inf }
 0x315   :  { %243 = vmax.xlane.f32.xlu0 %v242_v60 }
 0x3a2   :  { %v244_v61 = vpop.xlane.xlu0 %243 }
 0x3a3   :  { %v245_v62 = vsub.f32 %v240_v59, %v244_v61 }
 0x3a5   :  { %v246_v63 = vmul.f32 1.442695, %v245_v62 }
 0x3a7   :  { %330 = vpow2.f32 %v246_v63 }
 0x3b1   :  { %v331_v0 = vpop.eup %330 }
 0x3b2   :  { %v248_v1 = vsel %vm241_vm6, %v331_v0, 0.0 }
 0x3b3   :  { %249 = vadd.xlane.f32.xlu1 %v248_v1 }
 0x440   :  { %v250_v2 = vpop.xlane.xlu1 %249 }
 0x441   :  { %332 = vrcp.f32 %v250_v2 }
 0x44b   :  { %v333_v3 = vpop.eup %332 }
 0x44c   :  { %v252_v4 = vmul.f32 %v333_v3, %v331_v0 }
 0x44e   :  { %253 = vst.msk [vmem:[#allocation2] sm:$0x3] %vm241_vm6, %v252_v4 }
 0x44f   :  { %345 = shalt.err (!%p342_p4)
}
 0x450   :  { %s346_s17 = scalar_lea.hbm %s456_s5, 32 }
 0x451   :  { %p347_p5 = scmp.ne.s32.totalorder %s456_s5, %s346_s17  ;;  %p350_p6 = scmp.lt.u32.totalorder %s346_s17, %s456_s5 }
 0x453   :  { %p352_p7 = pnand %p350_p6, %p347_p5 }
 0x455   :  { %355 = shalt.err (!%p352_p7)
}
 0x456   :  { %263 = dma.vmem_to_hbm [thread:$0]  %s261_s3, 32, %s456_s5, [#allocation3]  }
 0x457   :  { %356 = dma.done.wait [#allocation3], 32  }
 0x458   :  { %357 = vsyncadd [#allocation3], 4294967264 }
 0x459   :  { %267 = vsyncpa [#allocation3], 1 }

</bundles_post_ra>
